<compile_context>
chip_gen: v5e
topology: v5e:2x2
jax: 0.10.0
libtpu: 0.0.40
codegen_flags: <defaults>
</compile_context>

<pallas_src>
import jax
import jax.numpy as jnp
from jax.experimental import pallas as pl
from jax.experimental.pallas import tpu as pltpu


def _fold_lanes(v):
    """Sum a (1, TP) row down to a (1, 128) per-lane partial (TP % 128 == 0)."""
    tp = v.shape[-1]
    acc = v[:, 0:128]
    for c in range(1, tp // 128):
        acc = acc + v[:, c * 128:(c + 1) * 128]
    return acc


def _fullmodel_kernel(x_ref, wt_ref, b_ref, lab_ref, logits_ref, stats_ref):
    # x_ref      : (1, C, TP)   channels-first pixel tile, TP pixels on lanes
    # wt_ref     : (K, C)       transposed 1x1-conv weight
    # b_ref      : (K, 1)       bias
    # lab_ref    : (1, 1, TP)   int32 labels (-1 == ignore)
    # logits_ref : (1, K, TP)   already NCHW-flat -> no wrapper transpose
    # stats_ref  : (3, 128)     per-block lane partials [loss, valid, correct]
    x = x_ref[0, :, :]                                        # (C, TP)
    k = logits_ref.shape[1]
    tp = logits_ref.shape[2]

    # ----- model: 1x1 conv == per-pixel matmul, pixels stay on the lane axis -----
    logits = jnp.dot(wt_ref[...], x,
                     preferred_element_type=jnp.float32) + b_ref[...]   # (K, TP)
    logits_ref[0, :, :] = logits

    lab = lab_ref[0, :, :]                                    # (1, TP) int32
    valid_f = (lab >= 0).astype(jnp.float32)                  # (1, TP)

    iota_k = jax.lax.broadcasted_iota(jnp.int32, (k, tp), 0)  # class id per sublane
    onehot = (iota_k == lab).astype(jnp.float32)              # (K, TP)

    # ----- loss: masked cross-entropy (stable log-sum-exp), reduce over classes -----
    m = jnp.max(logits, axis=0, keepdims=True)                # (1, TP)
    lse = m + jnp.log(jnp.sum(jnp.exp(logits - m), axis=0, keepdims=True))
    logit_y = jnp.sum(onehot * logits, axis=0, keepdims=True)
    ce = lse - logit_y                                        # (1, TP); masked below

    # ----- pixel_acc: argmax over classes (first max, like torch.max) -----
    preds = jnp.min(jnp.where(logits == m, iota_k, jnp.int32(k)),
                    axis=0, keepdims=True)                    # (1, TP)
    correct_f = valid_f * (preds == lab).astype(jnp.float32)

    # Per-block lane partials; the final cross-lane reduce happens in the wrapper.
    stats_ref[...] = jnp.concatenate(
        [_fold_lanes(valid_f * ce), _fold_lanes(valid_f), _fold_lanes(correct_f)],
        axis=0)                                               # (3, 128)


def _pick_tile(hw, target=2048):
    """Largest multiple of 128 that divides hw and is <= target."""
    for d in range(min(hw, target) // 128, 0, -1):
        t = d * 128
        if hw % t == 0:
            return t
    # TODO(synk): pad/mask the last partial tile for H*W not a multiple of 128.
    raise ValueError(f"H*W (= {hw}) must be a multiple of 128")


@jax.jit
def full_model_forward(x_nchw, labels_bhw, weight, bias):
    """FullModel.forward: returns (loss[1], outputs (B,K,H,W), acc scalar)."""
    B, C, H, W = x_nchw.shape
    K = weight.shape[1]
    HW = H * W
    TP = _pick_tile(HW)
    T = HW // TP
    G = B * T

    # Native NCHW layout: only free reshapes, no transposes in the wrapper.
    x_r = x_nchw.reshape(B, C, HW).astype(jnp.float32)
    lab_r = labels_bhw.reshape(B, 1, HW).astype(jnp.int32)
    wt = jnp.transpose(weight.astype(jnp.float32))            # (K, C), tiny
    b2d = bias.reshape(K, 1).astype(jnp.float32)

    logits_flat, stats = pl.pallas_call(
        _fullmodel_kernel,
        out_shape=(
            jax.ShapeDtypeStruct((B, K, HW), jnp.float32),
            jax.ShapeDtypeStruct((3, G * 128), jnp.float32),
        ),
        grid_spec=pltpu.PrefetchScalarGridSpec(
            num_scalar_prefetch=0,
            grid=(B, T),
            in_specs=[
                pl.BlockSpec((1, C, TP), lambda b, t: (b, 0, t)),
                pl.BlockSpec((K, C), lambda b, t: (0, 0)),
                pl.BlockSpec((K, 1), lambda b, t: (0, 0)),
                pl.BlockSpec((1, 1, TP), lambda b, t: (b, 0, t)),
            ],
            out_specs=[
                pl.BlockSpec((1, K, TP), lambda b, t: (b, 0, t)),
                pl.BlockSpec((3, 128), lambda b, t: (0, b * T + t)),
            ],
        ),
        # No carried accumulators -> fully parallel grid (megacore on v7x).
        compiler_params=pltpu.CompilerParams(
            dimension_semantics=("parallel", "parallel")),
    )(x_r, wt, b2d, lab_r)

    sums = jnp.sum(stats, axis=1)                 # [loss_sum, valid_sum, corr_sum]
    loss_sum, valid_sum, corr_sum = sums[0], sums[1], sums[2]
    # Matches nn.CrossEntropyLoss(ignore_index=-1) 'mean' (NaN if no valid pixel,
    # same as PyTorch).
    loss = (loss_sum / valid_sum)[None]           # torch.unsqueeze(loss, 0)
    acc = corr_sum / (valid_sum + 1e-10)          # pixel_acc
    outputs = logits_flat.reshape(B, K, H, W)     # already channels-first
    return loss, outputs, acc


def _reference(x, labels, weight, bias):
    """Pure-JAX reference of the same forward pass (for a sanity check)."""
    logits = jnp.einsum("bchw,ck->bkhw", x, weight) + bias[None, :, None, None]
    valid = (labels >= 0)
    valid_f = valid.astype(jnp.float32)
    lmax = jnp.max(logits, axis=1)
    lse = lmax + jnp.log(jnp.sum(jnp.exp(logits - lmax[:, None]), axis=1))
    safe_lab = jnp.maximum(labels, 0)
    logit_y = jnp.take_along_axis(logits, safe_lab[:, None], axis=1)[:, 0]
    ce = lse - logit_y
    loss = (jnp.sum(valid_f * ce) / jnp.sum(valid_f))[None]
    preds = jnp.argmax(logits, axis=1)
    acc = jnp.sum(valid_f * (preds == labels)) / (jnp.sum(valid_f) + 1e-10)
    return loss, logits, acc


if __name__ == "__main__":
    B, C, H, W = 2, 4, 16, 16
    K = 8  # num_classes

    key = jax.random.PRNGKey(0)
    kx, kl, kw, kb = jax.random.split(key, 4)

    x = jax.random.normal(kx, (B, C, H, W), dtype=jnp.float32)
    # labels in [-1, K); -1 marks ignored pixels
    labels = jax.random.randint(kl, (B, H, W), -1, K, dtype=jnp.int32)

    # deterministic parameter init for the 1x1 conv "model"
    weight = 0.1 * jax.random.normal(kw, (C, K), dtype=jnp.float32)
    bias = 0.01 * jax.random.normal(kb, (K,), dtype=jnp.float32)

    loss, outputs, acc = full_model_forward(x, labels, weight, bias)
    jax.block_until_ready((loss, outputs, acc))

    assert loss.shape == (1,)
    assert outputs.shape == (B, K, H, W)
    assert acc.shape == ()

    # Correctness check against a pure-JAX reference.
    r_loss, r_out, r_acc = _reference(x, labels, weight, bias)
    assert jnp.allclose(outputs, r_out, rtol=1e-3, atol=1e-3)
    assert jnp.allclose(loss, r_loss, rtol=1e-3, atol=1e-3)
    assert jnp.allclose(acc, r_acc, rtol=1e-3, atol=1e-3)

    print("KERNEL_OK")
</pallas_src>

<mosaic_0001>
module attributes {stable_mosaic.version = 11 : i64} {
  func.func @_fullmodel_kernel(%arg0: i32, %arg1: i32, %arg2: memref<1x4x256xf32, #tpu.memory_space<vmem>>, %arg3: memref<8x4xf32, #tpu.memory_space<vmem>>, %arg4: memref<8x1xf32, #tpu.memory_space<vmem>>, %arg5: memref<1x1x256xi32, #tpu.memory_space<vmem>>, %arg6: memref<1x8x256xf32, #tpu.memory_space<vmem>>, %arg7: memref<3x128xf32, #tpu.memory_space<vmem>>) attributes {dimension_semantics = [#tpu.dimension_semantics<parallel>, #tpu.dimension_semantics<parallel>], iteration_bounds = array<i64: 2, 1>, scalar_prefetch = 0 : i64, scratch_operands = 0 : i64, tpu.core_type = #tpu.core_type<tc>, window_params = [{transform_indices = @transform_0, window_bounds = array<i64: 1, 4, 256>}, {pipeline_mode = #tpu.pipeline_mode<synchronous>, transform_indices = @transform_1, window_bounds = array<i64: 8, 4>}, {pipeline_mode = #tpu.pipeline_mode<synchronous>, transform_indices = @transform_2, window_bounds = array<i64: 8, 1>}, {transform_indices = @transform_3, window_bounds = array<i64: 1, 1, 256>}, {transform_indices = @transform_4, window_bounds = array<i64: 1, 8, 256>}, {transform_indices = @transform_5, window_bounds = array<i64: 3, 128>}]} {
    %c0 = arith.constant 0 : index
    %c0_0 = arith.constant 0 : index
    %c0_1 = arith.constant 0 : index
    %0 = vector.load %arg2[%c0, %c0_0, %c0_1] : memref<1x4x256xf32, #tpu.memory_space<vmem>>, vector<1x4x256xf32>
    %1 = vector.shape_cast %0 : vector<1x4x256xf32> to vector<4x256xf32>
    %c0_2 = arith.constant 0 : index
    %c0_3 = arith.constant 0 : index
    %2 = vector.load %arg3[%c0_2, %c0_3] : memref<8x4xf32, #tpu.memory_space<vmem>>, vector<8x4xf32>
    %cst = arith.constant dense<0.000000e+00> : vector<8x256xf32>
    %3 = tpu.matmul %2, %1, %cst {dimension_numbers = #tpu.dot_dimension_numbers<[1], [0], [0], [1], [0, 0, 1, 1], [], []>} : vector<8x4xf32>, vector<4x256xf32>, vector<8x256xf32> -> vector<8x256xf32>
    %c0_4 = arith.constant 0 : index
    %c0_5 = arith.constant 0 : index
    %4 = vector.load %arg4[%c0_4, %c0_5] : memref<8x1xf32, #tpu.memory_space<vmem>>, vector<8x1xf32>
    %5 = vector.broadcast %4 : vector<8x1xf32> to vector<8x256xf32>
    %6 = arith.addf %3, %5 : vector<8x256xf32>
    %c0_6 = arith.constant 0 : index
    %c0_7 = arith.constant 0 : index
    %c0_8 = arith.constant 0 : index
    %7 = vector.load %arg6[%c0_6, %c0_7, %c0_8] : memref<1x8x256xf32, #tpu.memory_space<vmem>>, vector<1x8x256xf32>
    %8 = vector.shape_cast %7 : vector<1x8x256xf32> to vector<8x256xf32>
    %9 = vector.shape_cast %6 : vector<8x256xf32> to vector<1x8x256xf32>
    tpu.vector_store %arg6[%c0_6, %c0_7, %c0_8], %9 {strides = array<i32>} : memref<1x8x256xf32, #tpu.memory_space<vmem>>, vector<1x8x256xf32>,
    %c0_9 = arith.constant 0 : index
    %c0_10 = arith.constant 0 : index
    %c0_11 = arith.constant 0 : index
    %10 = vector.load %arg5[%c0_9, %c0_10, %c0_11] : memref<1x1x256xi32, #tpu.memory_space<vmem>>, vector<1x1x256xi32>
    %11 = vector.shape_cast %10 : vector<1x1x256xi32> to vector<1x256xi32>
    %c0_i32 = arith.constant 0 : i32
    %12 = vector.broadcast %c0_i32 : i32 to vector<1x256xi32>
    %13 = arith.cmpi sge, %11, %12 : vector<1x256xi32>
    %14 = arith.extui %13 : vector<1x256xi1> to vector<1x256xi32>
    %15 = arith.sitofp %14 : vector<1x256xi32> to vector<1x256xf32>
    %16 = tpu.iota {dimensions = array<i32: 0>} : vector<8x256xi32>
    %17 = vector.broadcast %11 : vector<1x256xi32> to vector<8x256xi32>
    %18 = arith.cmpi eq, %16, %17 : vector<8x256xi32>
    %19 = arith.extui %18 : vector<8x256xi1> to vector<8x256xi32>
    %20 = arith.sitofp %19 : vector<8x256xi32> to vector<8x256xf32>
    %cst_12 = arith.constant dense<0xFF800000> : vector<256xf32>
    %21 = vector.multi_reduction <maximumf>, %6, %cst_12 [0] : vector<8x256xf32> to vector<256xf32>
    %22 = vector.shape_cast %21 : vector<256xf32> to vector<1x256xf32>
    %23 = vector.broadcast %22 : vector<1x256xf32> to vector<8x256xf32>
    %24 = arith.subf %6, %23 : vector<8x256xf32>
    %25 = math.exp %24 : vector<8x256xf32>
    %cst_13 = arith.constant dense<0.000000e+00> : vector<256xf32>
    %26 = vector.multi_reduction <add>, %25, %cst_13 [0] : vector<8x256xf32> to vector<256xf32>
    %27 = vector.shape_cast %26 : vector<256xf32> to vector<1x256xf32>
    %28 = math.log %27 : vector<1x256xf32>
    %29 = arith.addf %22, %28 : vector<1x256xf32>
    %30 = arith.mulf %20, %6 : vector<8x256xf32>
    %cst_14 = arith.constant dense<0.000000e+00> : vector<256xf32>
    %31 = vector.multi_reduction <add>, %30, %cst_14 [0] : vector<8x256xf32> to vector<256xf32>
    %32 = vector.shape_cast %31 : vector<256xf32> to vector<1x256xf32>
    %33 = arith.subf %29, %32 : vector<1x256xf32>
    %34 = vector.broadcast %22 : vector<1x256xf32> to vector<8x256xf32>
    %35 = arith.cmpf oeq, %6, %34 : vector<8x256xf32>
    %c8_i32 = arith.constant 8 : i32
    %36 = vector.broadcast %c8_i32 : i32 to vector<8x256xi32>
    %37 = arith.select %35, %16, %36 : vector<8x256xi1>, vector<8x256xi32>
    %cst_15 = arith.constant dense<2147483647> : vector<256xi32>
    %38 = vector.multi_reduction <minsi>, %37, %cst_15 [0] : vector<8x256xi32> to vector<256xi32>
    %39 = vector.shape_cast %38 : vector<256xi32> to vector<1x256xi32>
    %40 = arith.cmpi eq, %39, %11 : vector<1x256xi32>
    %41 = arith.extui %40 : vector<1x256xi1> to vector<1x256xi32>
    %42 = arith.sitofp %41 : vector<1x256xi32> to vector<1x256xf32>
    %43 = arith.mulf %15, %42 : vector<1x256xf32>
    %44 = arith.mulf %15, %33 : vector<1x256xf32>
    %45 = vector.extract_strided_slice %44 {offsets = [0, 0], sizes = [1, 128], strides = [1, 1]} : vector<1x256xf32> to vector<1x128xf32>
    %46 = vector.extract_strided_slice %44 {offsets = [0, 128], sizes = [1, 128], strides = [1, 1]} : vector<1x256xf32> to vector<1x128xf32>
    %47 = arith.addf %45, %46 : vector<1x128xf32>
    %48 = vector.extract_strided_slice %15 {offsets = [0, 0], sizes = [1, 128], strides = [1, 1]} : vector<1x256xf32> to vector<1x128xf32>
    %49 = vector.extract_strided_slice %15 {offsets = [0, 128], sizes = [1, 128], strides = [1, 1]} : vector<1x256xf32> to vector<1x128xf32>
    %50 = arith.addf %48, %49 : vector<1x128xf32>
    %51 = vector.extract_strided_slice %43 {offsets = [0, 0], sizes = [1, 128], strides = [1, 1]} : vector<1x256xf32> to vector<1x128xf32>
    %52 = vector.extract_strided_slice %43 {offsets = [0, 128], sizes = [1, 128], strides = [1, 1]} : vector<1x256xf32> to vector<1x128xf32>
    %53 = arith.addf %51, %52 : vector<1x128xf32>
    %54 = tpu.concatenate %47, %50, %53 in 0 : vector<1x128xf32>, vector<1x128xf32>, vector<1x128xf32> -> vector<3x128xf32>
    %c0_16 = arith.constant 0 : index
    %c0_17 = arith.constant 0 : index
    %55 = vector.load %arg7[%c0_16, %c0_17] : memref<3x128xf32, #tpu.memory_space<vmem>>, vector<3x128xf32>
    tpu.vector_store %arg7[%c0_16, %c0_17], %54 {strides = array<i32>} : memref<3x128xf32, #tpu.memory_space<vmem>>, vector<3x128xf32>,
    return
  }
  func.func @transform_0(%arg0: i32, %arg1: i32) -> (i32, i32, i32) {
    %c0_i32 = arith.constant 0 : i32
    %c0_i32_0 = arith.constant 0 : i32
    return %arg0, %c0_i32, %arg1 : i32, i32, i32
  }
  func.func @transform_1(%arg0: i32, %arg1: i32) -> (i32, i32) {
    %c0_i32 = arith.constant 0 : i32
    %c0_i32_0 = arith.constant 0 : i32
    %c0_i32_1 = arith.constant 0 : i32
    return %c0_i32, %c0_i32_0 : i32, i32
  }
  func.func @transform_2(%arg0: i32, %arg1: i32) -> (i32, i32) {
    %c0_i32 = arith.constant 0 : i32
    %c0_i32_0 = arith.constant 0 : i32
    %c0_i32_1 = arith.constant 0 : i32
    return %c0_i32, %c0_i32_0 : i32, i32
  }
  func.func @transform_3(%arg0: i32, %arg1: i32) -> (i32, i32, i32) {
    %c0_i32 = arith.constant 0 : i32
    %c0_i32_0 = arith.constant 0 : i32
    return %arg0, %c0_i32, %arg1 : i32, i32, i32
  }
  func.func @transform_4(%arg0: i32, %arg1: i32) -> (i32, i32, i32) {
    %c0_i32 = arith.constant 0 : i32
    %c0_i32_0 = arith.constant 0 : i32
    return %arg0, %c0_i32, %arg1 : i32, i32, i32
  }
  func.func @transform_5(%arg0: i32, %arg1: i32) -> (i32, i32) {
    %c1_i32 = arith.constant 1 : i32
    %0 = arith.muli %arg0, %c1_i32 : i32
    %1 = arith.addi %0, %arg1 : i32
    %c0_i32 = arith.constant 0 : i32
    %c0_i32_0 = arith.constant 0 : i32
    return %c0_i32, %1 : i32, i32
  }
}

</mosaic_0001>

<bundles_post_ra>
// kernel: full_model_forward.1
= control target key start
LH: loop header
LB: loop body
LE: loop exit
PB: predicated region body
PF: predicated region fallthrough
CT: control target
= control target key end

     0   :  { %s756_s18 = smov 0   ;;  %s758_s19 = smov 0   ;;  %s825_s0 = inlined_call_operand.vmem [shape: f32[2,4,256], index: 0, kind: input, shape index: {}]   ;;  %s826_s1 = inlined_call_operand.vmem [shape: f32[8,4], index: 1, kind: input, shape index: {}]   ;;  %s827_s2 = inlined_call_operand.vmem [shape: f32[8,1], index: 2, kind: input, shape index: {}]   ;;  %s828_s3 = inlined_call_operand.vmem [shape: s32[2,1,256], index: 3, kind: input, shape index: {}]   ;;  %s829_s4 = inlined_call_operand.vmem [shape: f32[2,8,256], index: 4, kind: output, shape index: {0}]   ;;  %s830_s5 = inlined_call_operand.vmem [shape: f32[3,256], index: 5, kind: output, shape index: {1}]  }
   0x1   :  { %s760_s20 = smov 0  }
   0x2 LB: > { %s28_s21 = sadd.s32 1, %s718_s19  ;;  %p645_p0 = scmp.ge.s32.totalorder %s722_s20, 1  ;;  %s722_s20 = sphi %s760_s20, %s16_s20   ;;  %s718_s19 = sphi %s758_s19, %s832_s19   ;;  %s714_s18 = sphi %s756_s18, %s831_s18  }
   0x3   : > { %p30_p1 = scmp.ge.s32.totalorder %s28_s21, 2  ;;  %p229_p2 = scmp.lt.s32.totalorder %s722_s20, 3 }
   0x5   : > { %s834_s21 = smov (%p30_p1, %s28_s21), 0  ;;  %p230_p3 = pnand %p645_p0, %p229_p2 }
   0x6   : > { %p279_p4 = scmp.lt.s32.totalorder (!%p230_p3), %s714_s18, 1 }
   0x7   : > { %233 = sbr.rel (%p230_p3) target bundleno = 214 (0xd6), region = 36 }
   0xc   : > { %v315_v0 = vld [vmem:[%s827_s2] sm:$0xff]  ;;  %v724_v1 = vmov 0   ;;  %s836_s18 = smov (!%p279_p4, %s714_s18), 1  ;;  %vm329_vm0 = vcmask 1043456   ;;  %vm325_vm1 = vcmask 31744   ;;  %v380_v19 = vlaneseq }
   0xd   : > { %691 = vset.pattern.permute.xlu0 %v724_v1  ;;  %s663_s24 = sshll.u32 %s836_s18, 3  ;;  %v314_v3 = vld [vmem:[%s826_s1] sm:$0xff]  ;;  %s664_s30 = sshll.u32 %s836_s18, 4  ;;  %v725_v38 = vmov 0.0   ;;  %vm473_vm15 = vcmask 1040384  }
   0xe   : > { %318 = vperm.xlu0 %691, %v315_v0   ;;  %s286_s27 = scalar_lea.vmem %s825_s0, %s663_s24  ;;  %s305_s8 = scalar_lea.vmem %s829_s4, %s664_s30  ;;  %v381_v25 = vshrl.u32 %v380_v19, 7 }
   0xf   : > { %v313_v2 = vld [vmem:[%s286_s27] sm:$0xff]  ;;  %s648_s9 = sshll.u32 %s836_s18, 1  ;;  %s651_s13 = sshll.u32 %s836_s18, 2 }
  0x10   : > { %322 = vst [vmem:[#allocation1] ss:$2 sm:$0xff] %v313_v2  ;;  %s295_s12 = scalar_lea.vmem %s828_s3, %s648_s9  ;;  %s311_s16 = scalar_lea.vmem %s830_s5, %s651_s13 }
  0x11   : > { %v794_v20 = vld [vmem:[%s295_s12] sm:$0x3] }
  0x12   : > { %v383_v26 = vperm.slane %v794_v20, 1  ;;  %v382_v29 = vperm.slane %v794_v20, 0  ;;  %vm377_vm14 = vcmp.ge.s32.totalorder %v794_v20, 0 }
  0x14   : > { %vm385_vm4 = vcmp.eq.s32.totalorder %v381_v25, %v383_v26  ;;  %vm384_vm6 = vcmp.eq.s32.totalorder %v381_v25, %v382_v29 }
  0x15   : > { %v658_v39 = vsel %vm385_vm4, 1.0, %v725_v38  ;;  %v657_v41 = vsel %vm384_vm6, 1.0, %v725_v38 }
  0x17   : > { %v323_v4 = vld.sshfl [vmem:[#allocation1] sm:$0xff pattern:$0x75316420]  ;;  %v324_v5 = vld.sshfl [vmem:[#allocation1 + $0x8] sm:$0xff pattern:$0x75316420] }
  0x18   : > { %652 = vmatpush.msk.msra.mxu0 %vm329_vm0, %v323_v4  ;;  %654 = vmatpush.msk.msra.mxu1 %vm329_vm0, %v324_v5  ;;  %vm502_vm0 = vcmask 1041408  }
  0x19   : > { %653 = vmatmul.msk.f32.vlgmr.msra.gmra.mxu0 %vm325_vm1, %v314_v3  ;;  %655 = vmatmul.msk.f32.vlgmr.msra.gmra.mxu1 %vm325_vm1, %v314_v3 }
  0x80   : > { %v319_v6 = vpop.permute.xlu0 %318 }
  0x96   : > { %v351_v7 = vpop.f32.mrf.mxu0  ;;  %v371_v8 = vpop.f32.mrf.mxu1 }
  0x97   : > { %v352_v9 = vadd.f32 %v351_v7, %v319_v6  ;;  %v372_v10 = vadd.f32 %v371_v8, %v319_v6 }
  0x99   : > { %374 = vst [vmem:[%s305_s8] sm:$0xff] %v352_v9  ;;  %v390_v11 = vrot.slane %v352_v9, 4  ;;  %v396_v12 = vrot.slane %v372_v10, 4  ;;  %v427_v43 = vmul.f32 %v658_v39, %v372_v10  ;;  %v426_v47 = vmul.f32 %v657_v41, %v352_v9 }
  0x9a   : > { %375 = vst [vmem:[%s305_s8 + $0x8] sm:$0xff] %v372_v10 }
  0x9b   : > { %v391_v13 = vmax.f32 %v352_v9, %v390_v11  ;;  %v397_v14 = vmax.f32 %v372_v10, %v396_v12  ;;  %v434_v53 = vrot.slane %v427_v43, 4  ;;  %v428_v56 = vrot.slane %v426_v47, 4 }
  0x9d   : > { %v392_v15 = vrot.slane %v391_v13, 2  ;;  %v398_v16 = vrot.slane %v397_v14, 2  ;;  %v435_v60 = vadd.f32 %v434_v53, %v427_v43  ;;  %v429_v0 = vadd.f32 %v428_v56, %v426_v47 }
  0x9f   : > { %v393_v17 = vmax.f32 %v391_v13, %v392_v15  ;;  %v399_v18 = vmax.f32 %v397_v14, %v398_v16  ;;  %v436_v3 = vrot.slane %v435_v60, 2  ;;  %v430_v5 = vrot.slane %v429_v0, 2 }
  0xa0   : > { %v656_v15 = vsel %vm377_vm14, 1.0, %v725_v38 }
  0xa1   : > { %v394_v21 = vrot.slane %v393_v17, 1  ;;  %v400_v22 = vrot.slane %v399_v18, 1  ;;  %v437_v8 = vadd.f32 %v436_v3, %v435_v60  ;;  %v488_v20 = vrot.slane %v656_v15, 1 }
  0xa3   : > { %v796_v23 = vmax.f32 %v393_v17, %v394_v21  ;;  %v798_v24 = vmax.f32 %v399_v18, %v400_v22  ;;  %v438_v13 = vrot.slane %v437_v8, 1 }
  0xa5   : > { %v402_v27 = vsub.f32 %v352_v9, %v796_v23  ;;  %vm442_vm2 = vcmp.eq.f32.partialorder %v352_v9, %v796_v23  ;;  %v403_v28 = vsub.f32 %v372_v10, %v798_v24  ;;  %vm443_vm3 = vcmp.eq.f32.partialorder %v372_v10, %v798_v24 }
  0xa6   : > { %v444_v30 = vsel %vm442_vm2, %v381_v25, 8  ;;  %v445_v34 = vsel %vm443_vm3, %v381_v25, 8  ;;  %v431_v10 = vadd.f32 %v430_v5, %v429_v0  ;;  %v439_v25 = vadd.f32 %v438_v13, %v437_v8 }
  0xa7   : > { %v404_v31 = vmul.f32 1.442695, %v402_v27  ;;  %v446_v32 = vrot.slane %v444_v30, 4  ;;  %v406_v33 = vmul.f32 1.442695, %v403_v28  ;;  %v455_v35 = vrot.slane %v445_v34, 4 }
  0xa8   : > { %v432_v18 = vrot.slane %v431_v10, 1 }
  0xa9   : > { %692 = vpow2.f32 %v404_v31  ;;  %vm447_vm5 = vcmp.lt.s32.totalorder %v444_v30, %v446_v32  ;;  %vm456_vm7 = vcmp.lt.s32.totalorder %v445_v34, %v455_v35 }
  0xaa   : > { %v448_v36 = vsel %vm447_vm5, %v444_v30, %v446_v32  ;;  %694 = vpow2.f32 %v406_v33  ;;  %v457_v40 = vsel %vm456_vm7, %v445_v34, %v455_v35  ;;  %v433_v27 = vadd.f32 %v432_v18, %v431_v10 }
  0xab   : > { %v449_v37 = vrot.slane %v448_v36, 2  ;;  %v458_v42 = vrot.slane %v457_v40, 2  ;;  %v490_v32 = vadd.f32 %v656_v15, %v488_v20 }
  0xad   : > { %vm450_vm8 = vcmp.lt.s32.totalorder %v448_v36, %v449_v37  ;;  %vm459_vm9 = vcmp.lt.s32.totalorder %v457_v40, %v458_v42 }
  0xae   : > { %v460_v48 = vsel %vm459_vm9, %v457_v40, %v458_v42  ;;  %v451_v52 = vsel %vm450_vm8, %v448_v36, %v449_v37  ;;  %v496_v36 = vperm.slane %v490_v32, 0 }
  0xaf   : > { %v693_v44 = vpop.eup %692  ;;  %v461_v50 = vrot.slane %v460_v48, 1  ;;  %v452_v57 = vrot.slane %v451_v52, 1 }
  0xb0   : > { %v695_v45 = vpop.eup %694  ;;  %v408_v46 = vrot.slane %v693_v44, 4 }
  0xb1   : > { %v414_v49 = vrot.slane %v695_v45, 4  ;;  %vm462_vm10 = vcmp.lt.s32.totalorder %v460_v48, %v461_v50  ;;  %vm453_vm11 = vcmp.lt.s32.totalorder %v451_v52, %v452_v57 }
  0xb2   : > { %v409_v51 = vadd.f32 %v693_v44, %v408_v46  ;;  %v463_v61 = vsel %vm462_vm10, %v460_v48, %v461_v50  ;;  %v454_v6 = vsel %vm453_vm11, %v451_v52, %v452_v57 }
  0xb3   : > { %v415_v54 = vadd.f32 %v695_v45, %v414_v49  ;;  %vm465_vm12 = vcmp.eq.s32.totalorder %v463_v61, %v383_v26  ;;  %vm464_vm13 = vcmp.eq.s32.totalorder %v454_v6, %v382_v29 }
  0xb4   : > { %v410_v55 = vrot.slane %v409_v51, 2  ;;  %v660_v7 = vsel %vm465_vm12, 1.0, %v725_v38  ;;  %v659_v12 = vsel %vm464_vm13, 1.0, %v725_v38 }
  0xb5   : > { %v416_v58 = vrot.slane %v415_v54, 2  ;;  %v472_v9 = vrot.slane %v660_v7, 7 }
  0xb6   : > { %v411_v59 = vadd.f32 %v410_v55, %v409_v51 }
  0xb7   : > { %v417_v62 = vadd.f32 %v416_v58, %v415_v54  ;;  %v474_v17 = vsel %vm473_vm15, %v659_v12, %v472_v9 }
  0xb8   : > { %v412_v63 = vrot.slane %v411_v59, 1  ;;  %v476_v26 = vmul.f32 %v656_v15, %v474_v17 }
  0xb9   : > { %v418_v1 = vrot.slane %v417_v62, 1 }
  0xba   : > { %v413_v2 = vadd.f32 %v412_v63, %v411_v59  ;;  %v492_v31 = vrot.slane %v476_v26, 1 }
  0xbb   : > { %v419_v4 = vadd.f32 %v418_v1, %v417_v62 }
  0xbc   : > { %696 = vlog2.f32 %v413_v2  ;;  %v494_v35 = vadd.f32 %v492_v31, %v476_v26 }
  0xbd   : > { %698 = vlog2.f32 %v419_v4 }
  0xc2   : > { %v697_v11 = vpop.eup %696 }
  0xc3   : > { %v699_v14 = vpop.eup %698  ;;  %v421_v16 = vmul.f32 0.6931472, %v697_v11 }
  0xc4   : > { %v423_v19 = vmul.f32 0.6931472, %v699_v14 }
  0xc5   : > { %v424_v21 = vadd.f32 %v421_v16, %v796_v23  ;;  %v499_v23 = vperm.slane %v494_v35, 0 }
  0xc6   : > { %v425_v22 = vadd.f32 %v423_v19, %v798_v24 }
  0xc7   : > { %v440_v29 = vsub.f32 %v424_v21, %v433_v27 }
  0xc8   : > { %v441_v28 = vsub.f32 %v425_v22, %v439_v25 }
  0xca   : > { %v479_v30 = vrot.slane %v441_v28, 7 }
  0xcc   : > { %v480_v33 = vsel %vm473_vm15, %v440_v29, %v479_v30 }
  0xcd   : > { %v482_v34 = vmul.f32 %v656_v15, %v480_v33 }
  0xcf   : > { %v484_v37 = vrot.slane %v482_v34, 1 }
  0xd1   : > { %v486_v38 = vadd.f32 %v484_v37, %v482_v34 }
  0xd3   : > { %v501_v24 = vsel %vm473_vm15, %v486_v38, %v496_v36 }
  0xd4   : > { %v503_v39 = vsel %vm502_vm0, %v501_v24, %v499_v23 }
  0xd5   : > { %504 = vst [vmem:[%s311_s16] sm:$0x7] %v503_v39 }
  0xd6 PF: > { %s16_s20 = sadd.s32 1, %s722_s20   ;;  %s831_s18 = smov %s718_s19 }
  0xd7   : > { %p13_p5 = scmp.ge.s32.totalorder %s16_s20, 4   ;;  %s832_s19 = smov %s834_s21 }
  0xd9   :  { %15 = sbr.rel (!%p13_p5) target bundleno = 2 (0x2), region = 81 }

</bundles_post_ra>
